<compile_context>
chip_gen: v7x
topology: tpu7x:2x2x1
jax: 0.10.0
libtpu: 0.0.40
codegen_flags: <defaults>
</compile_context>

<pallas_src>
import math

import jax
import jax.numpy as jnp
from jax.experimental import pallas as pl
from jax.experimental.pallas import tpu as pltpu


_MiB = 1024 * 1024


def _vmem_budget_bytes():
    """Chip-aware VMEM budget for the kernel's buffers, plus physical capacity."""
    try:
        cap = int(pltpu.get_tpu_info().vmem_capacity_bytes)
    except Exception:
        cap = 64 * _MiB  # assume v7x (smallest current VMEM) if query unavailable
    budget = (cap * 3) // 8                      # ~24 MiB on v7x, ~48 MiB on v5e/v6e
    budget = max(16 * _MiB, min(budget, 56 * _MiB))
    return budget, cap


def _bytes_per_row(d, out_d, out_itemsize):
    # Double-buffered input & output DMA buffers + ~3 f32 working slabs for the
    # fused elementwise chain / recurrence parts.
    return 2 * 4 * d + 2 * out_itemsize * out_d + 3 * 4 * out_d


def _choose_row_tile(n, d, out_d, tm_req, out_itemsize, vmem_budget_bytes):
    """Large, VMEM-safe row tile with an even, balanced grid (v7x 2-TC friendly)."""
    row_align = 8 if out_itemsize >= 4 else 16   # bf16 packs (16, 128) tiles

    def up(v):
        return -(-v // row_align) * row_align

    def dn(v):
        return max(row_align, (v // row_align) * row_align)

    bpr = _bytes_per_row(d, out_d, out_itemsize)
    tm_cap = dn(max(row_align, vmem_budget_bytes // max(1, bpr)))
    tm = min(dn(max(row_align, tm_req)), tm_cap)

    if n <= tm:
        # Whole problem fits one tile.  Split into 2 balanced tiles so both of
        # v7x's TensorCores get work, unless it is too small to bother.
        if n <= 4 * row_align:
            return n                              # tiny: single full-extent block
        steps = 2
    else:
        steps = -(-n // tm)
        if steps % 2:
            steps += 1                            # even step count for 2 TCs
    tm = min(up(-(-n // steps)), tm_cap)          # balanced, aligned tile
    return max(row_align, tm)


def make_positional_encoding(length, n, d, *, tm=8192, out_dtype=jnp.float32,
                             use_recurrence=None, reseed_every=4):
    """Returns fn(x: (n, d) f32) -> (n, 2*length*d) out_dtype."""
    out_d = 2 * length * d
    out_itemsize = jnp.dtype(out_dtype).itemsize
    budget, cap = _vmem_budget_bytes()
    tm = _choose_row_tile(n, d, out_d, tm, out_itemsize, budget)
    reseed_every = max(1, int(reseed_every))

    if use_recurrence is None:
        # Only worth it when per-band (tm, d) slabs are reasonably lane-dense.
        use_recurrence = (d >= 64) and (length >= 2)

    grid = (pl.cdiv(n, tm),)

    # Explicit VMEM limit: estimated peak + headroom, never exceeding physical.
    peak = tm * _bytes_per_row(d, out_d, out_itemsize) + 2 * 4 * 8 * out_d
    vmem_limit = int(min(cap - 8 * _MiB, max(32 * _MiB, peak + 16 * _MiB)))

    compiler_params = pltpu.CompilerParams(
        dimension_semantics=("parallel",),
        vmem_limit_bytes=vmem_limit,
    )

    if use_recurrence:
        # sin/cos of the reseed bands computed directly; other bands derived by
        # angle doubling (bounded error growth: at most reseed_every-1 doublings).
        def pe_kernel(x_ref, o_ref):
            x = x_ref[...]                                   # (tm, d) f32
            parts = []
            s = c = None
            for k in range(length):
                if k % reseed_every == 0:
                    t = x * jnp.float32((2.0 ** k) * math.pi)
                    s = jnp.sin(t)
                    c = jnp.cos(t)
                else:
                    s, c = 2.0 * (s * c), 2.0 * (c * c) - 1.0
                parts.append(s)
                parts.append(c)
            o_ref[...] = jnp.concatenate(parts, axis=-1).astype(o_ref.dtype)

        in_specs = [pl.BlockSpec((tm, d), lambda i: (i, 0))]
        operands = ()
        transcendentals = 2 * n * d * (-(-length // reseed_every))
    else:
        # Lane-dense single-sin formulation over the full (tm, 2*L*d) tile.
        coeffs = jnp.exp2(jnp.arange(length, dtype=jnp.float32)) * jnp.float32(math.pi)
        coeff_lane = jnp.broadcast_to(
            jnp.repeat(coeffs, 2 * d)[None, :], (8, out_d))           # (8, out_d)
        half_phase = jnp.concatenate(
            [jnp.zeros((d,), jnp.float32),
             jnp.full((d,), math.pi / 2, jnp.float32)])
        phase_lane = jnp.broadcast_to(
            jnp.tile(half_phase, (length,))[None, :], (8, out_d))     # (8, out_d)

        def pe_kernel(x_ref, coeff_ref, phase_ref, o_ref):
            x_rep = jnp.tile(x_ref[...], (1, 2 * length))    # (tm, out_d) lane-dense
            t = x_rep * coeff_ref[0:1, :] + phase_ref[0:1, :]
            o_ref[...] = jnp.sin(t).astype(o_ref.dtype)      # single lane-dense store

        in_specs = [pl.BlockSpec((tm, d), lambda i: (i, 0)),
                    pl.BlockSpec((8, out_d), lambda i: (0, 0)),
                    pl.BlockSpec((8, out_d), lambda i: (0, 0))]
        operands = (coeff_lane, phase_lane)
        transcendentals = n * out_d

    cost = pl.CostEstimate(
        flops=4 * n * out_d,
        transcendentals=int(transcendentals),
        bytes_accessed=n * d * 4 + n * out_d * out_itemsize,
    )

    pe_call = pl.pallas_call(
        pe_kernel,
        out_shape=jax.ShapeDtypeStruct((n, out_d), out_dtype),
        grid_spec=pltpu.PrefetchScalarGridSpec(
            num_scalar_prefetch=0,
            grid=grid,
            in_specs=in_specs,
            out_specs=pl.BlockSpec((tm, out_d), lambda i: (i, 0)),
        ),
        compiler_params=compiler_params,
        cost_estimate=cost,
    )

    @jax.jit
    def apply(x):
        return pe_call(x, *operands)

    return apply


def positional_encoding_ref(x, length):
    """Pure-JAX reference mirroring the PyTorch forward."""
    outs = []
    for k in range(length):
        c = (2.0 ** k) * math.pi
        outs.append(jnp.sin(c * x))
        outs.append(jnp.cos(c * x))
    return jnp.concatenate(outs, axis=-1)


if __name__ == "__main__":
    key = jax.random.PRNGKey(0)

    # --- 1) small smoke test: direct path, single full-extent block ---
    L, N, D = 4, 16, 16
    x = jax.random.normal(key, (N, D), dtype=jnp.float32)
    out = jax.block_until_ready(make_positional_encoding(L, N, D)(x))
    ref = positional_encoding_ref(x, L)
    assert out.shape == (N, 2 * L * D), out.shape
    assert jnp.allclose(out, ref, atol=1e-4, rtol=1e-4), "mismatch (small/direct)"

    # --- 2) multi-step balanced grid + ragged rows: direct path ---
    L2, N2, D2 = 6, 4100, 16
    x2 = jax.random.normal(jax.random.PRNGKey(0), (N2, D2), dtype=jnp.float32)
    out2 = jax.block_until_ready(make_positional_encoding(L2, N2, D2)(x2))
    ref2 = positional_encoding_ref(x2, L2)
    assert out2.shape == (N2, 2 * L2 * D2), out2.shape
    assert jnp.allclose(out2, ref2, atol=1e-4, rtol=1e-4), "mismatch (mid/direct)"

    # --- 3) wide-feature case: angle-doubling recurrence path (D >= 64) ---
    L3, N3, D3 = 6, 512, 128
    x3 = jax.random.uniform(jax.random.PRNGKey(0), (N3, D3), dtype=jnp.float32,
                            minval=-1.0, maxval=1.0)     # NeRF-style normalized coords
    out3 = jax.block_until_ready(make_positional_encoding(L3, N3, D3)(x3))
    ref3 = positional_encoding_ref(x3, L3)
    assert out3.shape == (N3, 2 * L3 * D3), out3.shape
    assert jnp.allclose(out3, ref3, atol=1e-4, rtol=1e-4), "mismatch (wide/recurrence)"

    # --- 4) bf16 output lever (write-bound v5e); looser tolerance for bf16 ---
    out4 = jax.block_until_ready(
        make_positional_encoding(L, N, D, out_dtype=jnp.bfloat16)(x))
    assert out4.dtype == jnp.bfloat16
    assert jnp.allclose(out4.astype(jnp.float32), ref, atol=1e-2, rtol=1e-2), \
        "mismatch (bf16)"

    print("KERNEL_OK")
</pallas_src>

<mosaic_0001>
module attributes {stable_mosaic.version = 11 : i64} {
  func.func @pe_kernel(%arg0: i32, %arg1: memref<16x16xf32, #tpu.memory_space<vmem>>, %arg2: memref<8x128xf32, #tpu.memory_space<vmem>>, %arg3: memref<8x128xf32, #tpu.memory_space<vmem>>, %arg4: memref<16x128xf32, #tpu.memory_space<vmem>>) attributes {dimension_semantics = [#tpu.dimension_semantics<parallel>], iteration_bounds = array<i64: 1>, scalar_prefetch = 0 : i64, scratch_operands = 0 : i64, tpu.core_type = #tpu.core_type<tc>, window_params = [{transform_indices = @transform_0, window_bounds = array<i64: 16, 16>}, {pipeline_mode = #tpu.pipeline_mode<synchronous>, transform_indices = @transform_1, window_bounds = array<i64: 8, 128>}, {pipeline_mode = #tpu.pipeline_mode<synchronous>, transform_indices = @transform_2, window_bounds = array<i64: 8, 128>}, {transform_indices = @transform_3, window_bounds = array<i64: 16, 128>}]} {
    %c0 = arith.constant 0 : index
    %c0_0 = arith.constant 0 : index
    %0 = vector.load %arg1[%c0, %c0_0] : memref<16x16xf32, #tpu.memory_space<vmem>>, vector<16x16xf32>
    %1 = tpu.concatenate %0, %0, %0, %0, %0, %0, %0, %0 in 1 : vector<16x16xf32>, vector<16x16xf32>, vector<16x16xf32>, vector<16x16xf32>, vector<16x16xf32>, vector<16x16xf32>, vector<16x16xf32>, vector<16x16xf32> -> vector<16x128xf32>
    %c0_1 = arith.constant 0 : index
    %c0_2 = arith.constant 0 : index
    %2 = vector.load %arg2[%c0_1, %c0_2] : memref<8x128xf32, #tpu.memory_space<vmem>>, vector<1x128xf32>
    %3 = vector.broadcast %2 : vector<1x128xf32> to vector<16x128xf32>
    %4 = arith.mulf %1, %3 : vector<16x128xf32>
    %c0_3 = arith.constant 0 : index
    %c0_4 = arith.constant 0 : index
    %5 = vector.load %arg3[%c0_3, %c0_4] : memref<8x128xf32, #tpu.memory_space<vmem>>, vector<1x128xf32>
    %6 = vector.broadcast %5 : vector<1x128xf32> to vector<16x128xf32>
    %7 = arith.addf %4, %6 : vector<16x128xf32>
    %8 = math.sin %7 : vector<16x128xf32>
    %c0_5 = arith.constant 0 : index
    %c0_6 = arith.constant 0 : index
    %9 = vector.load %arg4[%c0_5, %c0_6] : memref<16x128xf32, #tpu.memory_space<vmem>>, vector<16x128xf32>
    tpu.vector_store %arg4[%c0_5, %c0_6], %8 {strides = array<i32>} : memref<16x128xf32, #tpu.memory_space<vmem>>, vector<16x128xf32>,
    return
  }
  func.func @transform_0(%arg0: i32) -> (i32, i32) {
    %c0_i32 = arith.constant 0 : i32
    %c0_i32_0 = arith.constant 0 : i32
    return %arg0, %c0_i32 : i32, i32
  }
  func.func @transform_1(%arg0: i32) -> (i32, i32) {
    %c0_i32 = arith.constant 0 : i32
    %c0_i32_0 = arith.constant 0 : i32
    %c0_i32_1 = arith.constant 0 : i32
    return %c0_i32, %c0_i32_0 : i32, i32
  }
  func.func @transform_2(%arg0: i32) -> (i32, i32) {
    %c0_i32 = arith.constant 0 : i32
    %c0_i32_0 = arith.constant 0 : i32
    %c0_i32_1 = arith.constant 0 : i32
    return %c0_i32, %c0_i32_0 : i32, i32
  }
  func.func @transform_3(%arg0: i32) -> (i32, i32) {
    %c0_i32 = arith.constant 0 : i32
    %c0_i32_0 = arith.constant 0 : i32
    return %arg0, %c0_i32 : i32, i32
  }
}

</mosaic_0001>

<bundles_post_ra>
// kernel: apply.1
= control target key start
LH: loop header
LB: loop body
LE: loop exit
PB: predicated region body
PF: predicated region fallthrough
CT: control target
= control target key end

     0   :  { %8 = vsyncpa [#allocation3], 0  ;;  %s681_s0 = inlined_call_operand.hbm [shape: f32[16,16], index: 0, kind: input, shape index: {}]   ;;  %s682_s1 = inlined_call_operand.hbm [shape: f32[8,128], index: 1, kind: input, shape index: {}]   ;;  %s683_s2 = inlined_call_operand.hbm [shape: f32[8,128], index: 2, kind: input, shape index: {}]   ;;  %s684_s3 = inlined_call_operand.hbm [shape: f32[16,128], index: 3, kind: output, shape index: {}]  }
   0x1   :  { %9 = vsyncpa [#allocation6], 0 }
   0x2   :  { %10 = vsyncpa [#allocation4], 0  ;;  %s500_s12 = smov [#allocation5]   ;;  %s501_s14 = smov [#allocation2]  }
   0x3   :  { %s29_s13 = sshll.u32 %s500_s12, 4  ;;  %s16_s15 = sshll.u32 %s501_s14, 4  ;;  %s30_s13 = int_to_ptr.vmem [resolvable:$true] %s29_s13  ;;  %s539_s15 = int_to_ptr.vmem [resolvable:$true] %s16_s15 }
   0x4   :  { %s406_s18 = scalar_lea.hbm %s682_s1, 128 }
   0x5   :  { %p407_p0 = scmp.ne.s32.totalorder %s682_s1, %s406_s18  ;;  %p410_p1 = scmp.lt.u32.totalorder %s406_s18, %s682_s1 }
   0x7   :  { %p412_p2 = pnand %p410_p1, %p407_p0 }
   0x9   :  { %415 = shalt.err (!%p412_p2)
}
   0xa   :  { %s416_s23 = scalar_lea.vmem %s30_s13, 128  ;;  %p421_p4 = scmp.lt.s32.totalorder %s30_s13, %s30_s13 }
   0xb   :  { %p417_p3 = scmp.ne.s32.totalorder %s30_s13, %s416_s23  ;;  %p422_p5 = scmp.lt.s32.totalorder %s416_s23, %s416_s23 }
   0xd   :  { %p423_p6 = por %p422_p5, %p421_p4 }
   0xf   :  { %p424_p7 = pnand %p423_p6, %p417_p3 }
  0x11   :  { %427 = shalt.err (!%p424_p7)
}
  0x12   :  { %32 = dma.hbm_to_vmem [thread:$0]  %s682_s1, 128, %s30_s13, [#allocation6]  }
  0x13   :  { %s428_s28 = scalar_lea.hbm %s681_s0, 256 }
  0x14   :  { %p429_p8 = scmp.ne.s32.totalorder %s681_s0, %s428_s28  ;;  %p432_p9 = scmp.lt.u32.totalorder %s428_s28, %s681_s0 }
  0x16   :  { %p434_p10 = pnand %p432_p9, %p429_p8 }
  0x18   :  { %437 = shalt.err (!%p434_p10)
}
  0x19   :  { %s438_s6 = scalar_lea.vmem %s539_s15, 256  ;;  %p443_p12 = scmp.lt.s32.totalorder %s539_s15, %s539_s15 }
  0x1a   :  { %p439_p11 = scmp.ne.s32.totalorder %s539_s15, %s438_s6  ;;  %p444_p13 = scmp.lt.s32.totalorder %s438_s6, %s438_s6 }
  0x1c   :  { %p445_p0 = por %p444_p13, %p443_p12 }
  0x1e   :  { %p446_p1 = pnand %p445_p0, %p439_p11 }
  0x20   :  { %449 = shalt.err (!%p446_p1)
}
  0x21   :  { %s502_s1 = smov 128   ;;  %s503_s7 = smov 8  }
  0x22   :  { %22 = dma.hbm_to_vmem [thread:$0]  %s681_s0, 256, %s539_s15, [#allocation3], %s502_s1, %s502_s1, %s503_s7  }
  0x23   :  { %s504_s10 = smov [#allocation7]   ;;  %s450_s14 = scalar_lea.hbm %s683_s2, 128 }
  0x24   :  { %s39_s11 = sshll.u32 %s504_s10, 4  ;;  %p451_p2 = scmp.ne.s32.totalorder %s683_s2, %s450_s14  ;;  %s40_s11 = int_to_ptr.vmem [resolvable:$true] %s39_s11 }
  0x25   :  { %p454_p3 = scmp.lt.u32.totalorder %s450_s14, %s683_s2 }
  0x27   :  { %p456_p4 = pnand %p454_p3, %p451_p2 }
  0x29   :  { %459 = shalt.err (!%p456_p4)
}
  0x2a   :  { %s460_s20 = scalar_lea.vmem %s40_s11, 128  ;;  %p465_p6 = scmp.lt.s32.totalorder %s40_s11, %s40_s11 }
  0x2b   :  { %p461_p5 = scmp.ne.s32.totalorder %s40_s11, %s460_s20  ;;  %p466_p7 = scmp.lt.s32.totalorder %s460_s20, %s460_s20 }
  0x2d   :  { %p467_p8 = por %p466_p7, %p465_p6 }
  0x2f   :  { %p468_p9 = pnand %p467_p8, %p461_p5 }
  0x31   :  { %471 = shalt.err (!%p468_p9)
}
  0x32   :  { %42 = dma.hbm_to_vmem [thread:$0]  %s683_s2, 128, %s40_s11, [#allocation6]  }
  0x33   :  { %494 = dma.done.wait [#allocation3], 256  }
  0x34   :  { %495 = vsyncadd [#allocation3], 4294967040 }
  0x35   :  { %496 = dma.done.wait [#allocation6], 256  }
  0x36   :  { %497 = vsyncadd [#allocation6], 4294967040  ;;  %v52_v0 = vld [vmem:[#allocation2] sm:$0xff]  ;;  %s505_s21 = smov 32   ;;  %s506_s22 = smov 16   ;;  %v53_v1 = vld [vmem:[#allocation2 + $0x8] sm:$0xff] }
  0x37   :  { %62 = vrot.lane.b32.xlu1 %v52_v0, %s505_s21  ;;  %56 = vrot.lane.b32.xlu0 %v52_v0, %s506_s22  ;;  %s507_s23 = smov 48   ;;  %s508_s24 = smov 64   ;;  %vm98_vm0 = vcmask 130048   ;;  %vm101_vm1 = vcmask 261120   ;;  %vm104_vm2 = vcmask 392192   ;;  %vm107_vm3 = vcmask 523264  }
  0x38   :  { %s509_s25 = smov 80   ;;  %s510_s2 = smov 96   ;;  %vm110_vm4 = vcmask 654336   ;;  %vm113_vm5 = vcmask 785408   ;;  %vm116_vm6 = vcmask 916480  }
  0x39   :  { %s511_s26 = smov 112   ;;  %v361_v24 = vld [vmem:[#allocation5] ss:$0 sm:$0xff]  ;;  %v362_v29 = vld [vmem:[#allocation7] ss:$0 sm:$0xff]  ;;  %s518_s27 = smov [#allocation8]  }
  0x3a   :  { %v512_v57 = vmov 2102212464   ;;  %v513_v59 = vmov 920167782   ;;  %s348_s28 = sshll.u32 %s518_s27, 4  ;;  %s349_s28 = int_to_ptr.vmem [resolvable:$true] %s348_s28 }
  0x3b   :  { %64 = vrot.lane.b32.xlu1 %v53_v1, %s505_s21  ;;  %58 = vrot.lane.b32.xlu0 %v53_v1, %s506_s22  ;;  %s472_s29 = scalar_lea.vmem %s349_s28, 256  ;;  %p477_p11 = scmp.lt.s32.totalorder %s349_s28, %s349_s28 }
  0x3c   :  { %p473_p10 = scmp.ne.s32.totalorder %s349_s28, %s472_s29  ;;  %p478_p12 = scmp.lt.s32.totalorder %s472_s29, %s472_s29 }
  0x3e   :  { %p479_p13 = por %p478_p12, %p477_p11 }
  0x3f   :  { %70 = vrot.lane.b32.xlu1 %v53_v1, %s507_s23  ;;  %68 = vrot.lane.b32.xlu0 %v52_v0, %s507_s23 }
  0x40   :  { %p480_p0 = pnand %p479_p13, %p473_p10 }
  0x43   :  { %76 = vrot.lane.b32.xlu1 %v53_v1, %s508_s24  ;;  %74 = vrot.lane.b32.xlu0 %v52_v0, %s508_s24 }
  0x47   :  { %82 = vrot.lane.b32.xlu1 %v53_v1, %s509_s25  ;;  %80 = vrot.lane.b32.xlu0 %v52_v0, %s509_s25 }
  0x4b   :  { %88 = vrot.lane.b32.xlu1 %v53_v1, %s510_s2  ;;  %86 = vrot.lane.b32.xlu0 %v52_v0, %s510_s2 }
  0x4f   :  { %94 = vrot.lane.b32.xlu1 %v53_v1, %s511_s26  ;;  %92 = vrot.lane.b32.xlu0 %v52_v0, %s511_s26 }
  0xa9   :  { %v63_v2 = vpop.permute.xlu1 %62  ;;  %v57_v3 = vpop.permute.xlu0 %56 }
  0xaa   :  { %v99_v12 = vsel %vm98_vm0, %v52_v0, %v57_v3  ;;  %v514_v0 = vmov 1326507024  }
  0xab   :  { %v102_v15 = vsel %vm101_vm1, %v99_v12, %v63_v2 }
  0xad   :  { %v65_v4 = vpop.permute.xlu1 %64  ;;  %v59_v5 = vpop.permute.xlu0 %58 }
  0xae   :  { %v100_v13 = vsel %vm98_vm0, %v53_v1, %v59_v5 }
  0xaf   :  { %v103_v14 = vsel %vm101_vm1, %v100_v13, %v65_v4 }
  0xb1   :  { %v71_v6 = vpop.permute.xlu1 %70  ;;  %v69_v7 = vpop.permute.xlu0 %68 }
  0xb2   :  { %v106_v18 = vsel %vm104_vm2, %v103_v14, %v71_v6  ;;  %v105_v19 = vsel %vm104_vm2, %v102_v15, %v69_v7  ;;  %v515_v6 = vmov 683565275  }
  0xb5   :  { %v77_v8 = vpop.permute.xlu1 %76  ;;  %v75_v9 = vpop.permute.xlu0 %74 }
  0xb6   :  { %v109_v20 = vsel %vm107_vm3, %v106_v18, %v77_v8  ;;  %v108_v21 = vsel %vm107_vm3, %v105_v19, %v75_v9  ;;  %v516_v8 = vmov 2475754826  }
  0xb9   :  { %v83_v10 = vpop.permute.xlu1 %82  ;;  %v81_v11 = vpop.permute.xlu0 %80 }
  0xba   :  { %v112_v22 = vsel %vm110_vm4, %v109_v20, %v83_v10  ;;  %v111_v23 = vsel %vm110_vm4, %v108_v21, %v81_v11  ;;  %v517_v11 = vmov 2131351028  }
  0xbd   :  { %v89_v16 = vpop.permute.xlu1 %88  ;;  %v87_v17 = vpop.permute.xlu0 %86 }
  0xbe   :  { %v115_v25 = vsel %vm113_vm5, %v112_v22, %v89_v16  ;;  %v114_v26 = vsel %vm113_vm5, %v111_v23, %v87_v17 }
  0xc1   :  { %v95_v27 = vpop.permute.xlu1 %94  ;;  %v93_v28 = vpop.permute.xlu0 %92 }
  0xc2   :  { %v118_v30 = vsel %vm116_vm6, %v115_v25, %v95_v27  ;;  %v117_v31 = vsel %vm116_vm6, %v114_v26, %v93_v28 }
  0xc3   :  { %v125_v32 = vmul.f32 %v361_v24, %v118_v30  ;;  %v124_v33 = vmul.f32 %v361_v24, %v117_v31 }
  0xc5   :  { %v585_v34 = vadd.f32 %v362_v29, %v125_v32  ;;  %v587_v35 = vadd.f32 %v362_v29, %v124_v33 }
  0xc7   :  { %v240_v36 = vand.u32 2139095040, %v585_v34  ;;  %v136_v37 = vand.u32 2139095040, %v587_v35  ;;  %v133_v38 = vand.u32 2147483647, %v587_v35  ;;  %v237_v43 = vand.u32 2147483647, %v585_v34 }
  0xc8   :  { %vm135_vm5 = vcmp.lt.s32.totalorder %v587_v35, 0 }
  0xc9   :  { %v241_v39 = vshrl.u32 %v240_v36, 23  ;;  %v137_v40 = vshrl.u32 %v136_v37, 23  ;;  %v140_v44 = vand.u32 8388607, %v133_v38  ;;  %v597_v47 = vand.u32 8388607, %v237_v43 }
  0xca   :  { %vm134_vm6 = vcmp.le.f32.partialorder %v133_v38, 0.7853982 }
  0xcb   :  { %v367_v41 = vadd.s32 4294967169, %v241_v39  ;;  %v363_v42 = vadd.s32 4294967169, %v137_v40  ;;  %v141_v50 = vor.u32 8388608, %v140_v44  ;;  %v245_v56 = vor.u32 8388608, %v597_v47 }
  0xcd   :  { %v247_v45 = vadd.s32 1, %v367_v41  ;;  %v143_v46 = vadd.s32 1, %v363_v42  ;;  %v604_v62 = vshll.u32 %v141_v50, 8 }
  0xcf   :  { %vm248_vm7 = vcmp.gt.s32.totalorder %v247_v45, 0  ;;  %vm144_vm8 = vcmp.gt.s32.totalorder %v143_v46, 0 }
  0xd0   :  { %v249_v48 = vsel %vm248_vm7, %v247_v45, 0  ;;  %v145_v49 = vsel %vm144_vm8, %v143_v46, 0  ;;  %vm239_vm7 = vcmp.lt.s32.totalorder %v585_v34, 0  ;;  %vm238_vm8 = vcmp.le.f32.partialorder %v237_v43, 0.7853982 }
  0xd1   :  { %v251_v51 = vand.u32 31, %v249_v48  ;;  %v147_v52 = vand.u32 31, %v145_v49  ;;  %v599_v53 = vshrl.u32 %v249_v48, 5  ;;  %v146_v55 = vshrl.u32 %v145_v49, 5 }
  0xd3   :  { %v601_v54 = vsub.s32 32, %v251_v51  ;;  %v263_v58 = vshll.u32 %v512_v57, %v251_v51  ;;  %v266_v60 = vshll.u32 %v513_v59, %v251_v51  ;;  %v148_v61 = vsub.s32 32, %v147_v52 }
  0xd4   :  { %v159_v2 = vshll.u32 %v512_v57, %v147_v52  ;;  %v162_v3 = vshll.u32 %v513_v59, %v147_v52  ;;  %vm272_vm9 = vcmp.lt.s32.totalorder %v599_v53, 4  ;;  %v150_v7 = vshll.u32 %v515_v6, %v147_v52 }
  0xd5   :  { %v264_v63 = vshrl.u32 %v513_v59, %v601_v54  ;;  %v267_v1 = vshrl.u32 %v514_v0, %v601_v54  ;;  %v160_v4 = vshrl.u32 %v513_v59, %v148_v61  ;;  %v163_v5 = vshrl.u32 %v514_v0, %v148_v61 }
  0xd6   :  { %v151_v9 = vshrl.u32 %v516_v8, %v148_v61  ;;  %vm168_vm10 = vcmp.lt.s32.totalorder %v146_v55, 4  ;;  %v153_v10 = vshll.u32 %v516_v8, %v147_v52  ;;  %v154_v12 = vshrl.u32 %v517_v11, %v148_v61 }
  0xd7   :  { %v156_v13 = vshll.u32 %v517_v11, %v147_v52  ;;  %v161_v14 = vor.u32 %v160_v4, %v159_v2  ;;  %v164_v15 = vor.u32 %v163_v5, %v162_v3  ;;  %v157_v17 = vshrl.u32 %v512_v57, %v148_v61 }
  0xd8   :  { %v152_v16 = vor.u32 %v151_v9, %v150_v7  ;;  %v265_v18 = vor.u32 %v264_v63, %v263_v58  ;;  %v268_v19 = vor.u32 %v267_v1, %v266_v60  ;;  %v149_v20 = vshrl.u32 %v515_v6, %v148_v61 }
  0xd9   :  { %v155_v21 = vor.u32 %v154_v12, %v153_v10  ;;  %v174_v22 = vsel %vm168_vm10, %v161_v14, 920167782  ;;  %v178_v23 = vsel %vm168_vm10, %v164_v15, 1326507024  ;;  %v158_v24 = vor.u32 %v157_v17, %v156_v13 }
  0xda   :  { %vm165_vm11 = vcmp.lt.s32.totalorder %v146_v55, 1  ;;  %vm166_vm12 = vcmp.lt.s32.totalorder %v146_v55, 2  ;;  %vm167_vm13 = vcmp.lt.s32.totalorder %v146_v55, 3  ;;  %v254_v36 = vshll.u32 %v515_v6, %v251_v51 }
  0xdb   :  { %v169_v25 = vsel %vm165_vm11, %v149_v20, %v152_v16  ;;  %v173_v26 = vsel %vm165_vm11, %v152_v16, %v155_v21  ;;  %v170_v27 = vsel %vm168_vm10, %v158_v24, 2102212464  ;;  %v175_v28 = vsel %vm167_vm13, %v158_v24, %v174_v22 }
  0xdc   :  { %v177_v29 = vsel %vm165_vm11, %v155_v21, %v158_v24  ;;  %v179_v30 = vsel %vm167_vm13, %v161_v14, %v178_v23  ;;  %v171_v31 = vsel %vm167_vm13, %v155_v21, %v170_v27  ;;  %v176_v32 = vsel %vm166_vm12, %v173_v26, %v175_v28 }
  0xdd   :  { %v180_v33 = vsel %vm166_vm12, %v177_v29, %v179_v30  ;;  %v172_v37 = vsel %vm166_vm12, %v169_v25, %v171_v31  ;;  %v255_v41 = vshrl.u32 %v516_v8, %v601_v54  ;;  %v282_v42 = vsel %vm272_vm9, %v268_v19, 1326507024 }
  0xde   :  { %v613_v39 = vmul.u32.u64.low %v604_v62, %v180_v33  ;;  %v614_v40 = vmul.u32.u64.high %v604_v62, %v180_v33, %v613_v39  ;;  %v620_v44 = vmul.u32.u64.low %v604_v62, %v176_v32  ;;  %v621_v45 = vmul.u32.u64.high %v604_v62, %v176_v32, %v620_v44 }
  0xdf   :  { %v257_v46 = vshll.u32 %v516_v8, %v251_v51  ;;  %v256_v48 = vor.u32 %v255_v41, %v254_v36  ;;  %v258_v49 = vshrl.u32 %v517_v11, %v601_v54  ;;  %v260_v50 = vshll.u32 %v517_v11, %v251_v51 }
  0xe0   :  { %v261_v52 = vshrl.u32 %v512_v57, %v601_v54  ;;  %v278_v55 = vsel %vm272_vm9, %v265_v18, 920167782  ;;  %v188_v58 = vmul.u32 %v604_v62, %v172_v37  ;;  %v253_v59 = vshrl.u32 %v515_v6, %v601_v54 }
  0xe1   :  { %v285_v60 = vshll.u32 %v245_v56, 8  ;;  %vm190_vm14 = vc.u32 %v614_v40, %v620_v44  ;;  %v259_v61 = vor.u32 %v258_v49, %v257_v46  ;;  %vm271_vm15 = vcmp.lt.s32.totalorder %v599_v53, 3 }
  0xe2   :  { %v262_v63 = vor.u32 %v261_v52, %v260_v50  ;;  %v191_v51 = vadd.s32 1, %v621_v45  ;;  %vm269_vm0 = vcmp.lt.s32.totalorder %v599_v53, 1  ;;  %vm270_vm1 = vcmp.lt.s32.totalorder %v599_v53, 2 }
  0xe3   :  { %v283_v57 = vsel %vm271_vm15, %v265_v18, %v282_v42  ;;  %v277_v54 = vsel %vm269_vm0, %v256_v48, %v259_v61  ;;  %v273_v1 = vsel %vm269_vm0, %v253_v59, %v256_v48  ;;  %v189_v28 = vadd.s32 %v620_v44, %v614_v40 }
  0xe4   :  { %v274_v62 = vsel %vm272_vm9, %v262_v63, 2102212464  ;;  %v279_v0 = vsel %vm271_vm15, %v262_v63, %v278_v55  ;;  %v281_v47 = vsel %vm269_vm0, %v259_v61, %v262_v63  ;;  %v192_v56 = vsel %vm190_vm14, %v191_v51, %v621_v45 }
  0xe5   :  { %v280_v2 = vsel %vm270_vm1, %v277_v54, %v279_v0  ;;  %v284_v3 = vsel %vm270_vm1, %v281_v47, %v283_v57  ;;  %v193_v4 = vadd.s32 %v192_v56, %v188_v58  ;;  %v275_v5 = vsel %vm271_vm15, %v259_v61, %v274_v62 }
  0xe6   :  { %v643_v6 = vmul.u32.u64.low %v285_v60, %v284_v3  ;;  %v644_v7 = vmul.u32.u64.high %v285_v60, %v284_v3, %v643_v6  ;;  %v646_v8 = vmul.u32.u64.low %v285_v60, %v280_v2  ;;  %v647_v9 = vmul.u32.u64.high %v285_v60, %v280_v2, %v646_v8 }
  0xe7   :  { %v194_v10 = vadd.s32 536870912, %v193_v4  ;;  %v276_v11 = vsel %vm270_vm1, %v273_v1, %v275_v5  ;;  %vm225_vm12 = vweird.f32 %v587_v35  ;;  %vm329_vm0 = vweird.f32 %v585_v34 }
  0xe8   :  { %vm294_vm2 = vc.u32 %v644_v7, %v646_v8  ;;  %v295_v13 = vadd.s32 1, %v647_v9  ;;  %v292_v15 = vmul.u32 %v285_v60, %v276_v11  ;;  %v293_v50 = vadd.s32 %v646_v8, %v644_v7 }
  0xe9   :  { %v195_v12 = vshrl.u32 %v194_v10, 30 }
  0xea   :  { %v296_v16 = vsel %vm294_vm2, %v295_v13, %v647_v9 }
  0xeb   :  { %v196_v14 = vshll.u32 %v195_v12, 30  ;;  %v297_v18 = vadd.s32 %v296_v16, %v292_v15  ;;  %v219_v44 = vsub.s32 4, %v195_v12 }
  0xed   :  { %v197_v17 = vsub.s32 %v193_v4, %v196_v14  ;;  %v298_v20 = vadd.s32 536870912, %v297_v18  ;;  %v220_v62 = vsel %vm135_vm5, %v219_v44, %v195_v12 }
  0xee   :  { %v222_v47 = vsel %vm134_vm6, 0, %v220_v62 }
  0xef   :  { %v199_v19 = vsub.s32 0, %v197_v17  ;;  %v299_v22 = vshrl.u32 %v298_v20, 30  ;;  %v226_v4 = vadd.s32 3, %v222_v47 }
  0xf1   :  { %v364_v21 = vmin.u32 %v199_v19, %v197_v17  ;;  %v300_v24 = vshll.u32 %v299_v22, 30  ;;  %v323_v3 = vsub.s32 4, %v299_v22  ;;  %v227_v7 = vand.u32 3, %v226_v4 }
  0xf3   :  { %v201_v23 = vclz %v364_v21  ;;  %v301_v53 = vsub.s32 %v297_v18, %v300_v24  ;;  %v324_v6 = vsel %vm239_vm7, %v323_v3, %v299_v22  ;;  %vm232_vm9 = vcmp.eq.s32.totalorder %v227_v7, 2 }
  0xf4   :  { %v326_v10 = vsel %vm238_vm8, 0, %v324_v6  ;;  %vm229_vm10 = vcmp.eq.s32.totalorder %v227_v7, 0  ;;  %vm228_vm11 = vcmp.lt.s32.totalorder %v227_v7, 2 }
  0xf5   :  { %v365_v25 = vadd.s32 4294967294, %v201_v23  ;;  %v303_v27 = vsub.s32 0, %v301_v53  ;;  %v330_v15 = vadd.s32 3, %v326_v10 }
  0xf7   :  { %vm366_vm3 = vcmp.lt.s32.totalorder %v365_v25, 0  ;;  %v368_v31 = vmin.u32 %v303_v27, %v301_v53  ;;  %v331_v18 = vand.u32 3, %v330_v15 }
  0xf8   :  { %v204_v26 = vsel %vm366_vm3, 0, %v365_v25 }
  0xf9   :  { %v205_v29 = vsub.s32 32, %v204_v26  ;;  %v209_v30 = vsub.s32 4294967266, %v204_v26  ;;  %v206_v32 = vshll.u32 %v197_v17, %v204_v26  ;;  %v305_v37 = vclz %v368_v31 }
  0xfa   :  { %vm336_vm13 = vcmp.eq.s32.totalorder %v331_v18, 2  ;;  %vm333_vm14 = vcmp.eq.s32.totalorder %v331_v18, 0  ;;  %vm332_vm15 = vcmp.lt.s32.totalorder %v331_v18, 2 }
  0xfb   :  { %v207_v33 = vshrl.u32 %v189_v28, %v205_v29  ;;  %v210_v36 = vadd.s32 127, %v209_v30  ;;  %v369_v42 = vadd.s32 4294967294, %v305_v37 }
  0xfd   :  { %v208_v39 = vor.u32 %v207_v33, %v206_v32  ;;  %v211_v41 = vshll.u32 %v210_v36, 23  ;;  %vm370_vm4 = vcmp.lt.s32.totalorder %v369_v42, 0 }
  0xfe   :  { %v308_v49 = vsel %vm370_vm4, 0, %v369_v42 }
  0xff   :  { %v212_v45 = vor.u32 4788187, %v211_v41  ;;  %v215_v48 = vcvt.s32.f32 %v208_v39  ;;  %v309_v52 = vsub.s32 32, %v308_v49  ;;  %v313_v55 = vsub.s32 4294967266, %v308_v49 }
 0x100   :  { %v310_v58 = vshll.u32 %v301_v53, %v308_v49 }
 0x101   :  { %v213_v46 = vand.u32 2147483647, %v212_v45  ;;  %v311_v59 = vshrl.u32 %v293_v50, %v309_v52  ;;  %v314_v60 = vadd.s32 127, %v313_v55 }
 0x103   :  { %v216_v40 = vmul.f32 %v215_v48, %v213_v46  ;;  %v312_v63 = vor.u32 %v311_v59, %v310_v58  ;;  %v315_v51 = vshll.u32 %v314_v60, 23 }
 0x105   :  { %v217_v61 = vxor.u32 2147483648, %v216_v40  ;;  %v316_v0 = vor.u32 4788187, %v315_v51  ;;  %v319_v1 = vcvt.s32.f32 %v312_v63 }
 0x107   :  { %v218_v57 = vsel %vm135_vm5, %v217_v61, %v216_v40  ;;  %v317_v56 = vand.u32 2147483647, %v316_v0 }
 0x108   :  { %v221_v54 = vsel %vm134_vm6, %v587_v35, %v218_v57 }
 0x109   :  { %398 = vcosq.f32 %v221_v54  ;;  %v320_v2 = vmul.f32 %v319_v1, %v317_v56 }
 0x10a   :  { %400 = vsinq.f32 %v221_v54 }
 0x10b   :  { %v321_v5 = vxor.u32 2147483648, %v320_v2 }
 0x10d   :  { %v322_v38 = vsel %vm239_vm7, %v321_v5, %v320_v2 }
 0x10e   :  { %v325_v8 = vsel %vm238_vm8, %v585_v34, %v322_v38 }
 0x10f   :  { %402 = vcosq.f32 %v325_v8 }
 0x110   :  { %404 = vsinq.f32 %v325_v8 }
 0x113   :  { %v399_v9 = vpop.eup %398 }
 0x114   :  { %v401_v11 = vpop.eup %400  ;;  %v233_v12 = vxor.u32 2147483648, %v399_v9 }
 0x115   :  { %v230_v13 = vxor.u32 2147483648, %v401_v11 }
 0x116   :  { %v234_v14 = vsel %vm232_vm9, %v233_v12, %v401_v11 }
 0x117   :  { %v231_v16 = vsel %vm229_vm10, %v399_v9, %v230_v13 }
 0x118   :  { %v235_v43 = vsel %vm228_vm11, %v231_v16, %v234_v14 }
 0x119   :  { %v236_v17 = vsel %vm225_vm12, nan, %v235_v43  ;;  %v403_v19 = vpop.eup %402 }
 0x11a   :  { %341 = vst [vmem:[#allocation8] sm:$0xff] %v236_v17  ;;  %v405_v20 = vpop.eup %404  ;;  %v337_v21 = vxor.u32 2147483648, %v403_v19 }
 0x11b   :  { %v334_v22 = vxor.u32 2147483648, %v405_v20 }
 0x11c   :  { %v338_v23 = vsel %vm336_vm13, %v337_v21, %v405_v20 }
 0x11d   :  { %v335_v24 = vsel %vm333_vm14, %v403_v19, %v334_v22 }
 0x11e   :  { %v339_v25 = vsel %vm332_vm15, %v335_v24, %v338_v23 }
 0x11f   :  { %v340_v35 = vsel %vm329_vm0, nan, %v339_v25 }
 0x120   :  { %342 = vst [vmem:[#allocation8 + $0x8] sm:$0xff] %v340_v35 }
 0x121   :  { %483 = shalt.err (!%p480_p0)
}
 0x122   :  { %s484_s5 = scalar_lea.hbm %s684_s3, 256 }
 0x123   :  { %p485_p1 = scmp.ne.s32.totalorder %s684_s3, %s484_s5  ;;  %p488_p2 = scmp.lt.u32.totalorder %s484_s5, %s684_s3 }
 0x125   :  { %p490_p3 = pnand %p488_p2, %p485_p1 }
 0x127   :  { %493 = shalt.err (!%p490_p3)
}
 0x128   :  { %354 = dma.vmem_to_hbm [thread:$0]  %s349_s28, 256, %s684_s3, [#allocation4], %s502_s1, %s502_s1, %s503_s7  }
 0x129   :  { %498 = dma.done.wait [#allocation4], 256  }
 0x12a   :  { %499 = vsyncadd [#allocation4], 4294967040 }
 0x12b   :  { %358 = vsyncpa [#allocation3], 1 }
 0x12c   :  { %359 = vsyncpa [#allocation6], 1 }
 0x12d   :  { %360 = vsyncpa [#allocation4], 1 }

</bundles_post_ra>
